<compile_context>
chip_gen: v7x
topology: tpu7x:2x2x1
jax: 0.10.0
libtpu: 0.0.40
codegen_flags: <defaults>
</compile_context>

<pallas_src>
import functools

import jax
import jax.numpy as jnp
from jax import lax
from jax.experimental import pallas as pl
from jax.experimental.pallas import tpu as pltpu


# ----------------------------------------------------------------------------
# Fused path: whole per-batch (C, HW) slab resident in VMEM, grid=(B,).
# ----------------------------------------------------------------------------
def _scse_fused_kernel(x_ref, w1_ref, b1_ref, w2t_ref, b2_ref, ws_ref, bs_ref,
                       o_ref, *, inv_hw):
    # x_ref: (1, C, HW); weights are tiny full-extent blocks; o_ref: (1, C, HW).
    xf = x_ref[0].astype(jnp.float32)                                   # (C, HW)

    # cSE: global average pool -> 2-layer MLP -> sigmoid.  Shapes are far below
    # MXU tile size, so everything stays on the VPU/XLU (no N=1 MXU matmuls).
    pooled = jnp.sum(xf, axis=1, keepdims=True) * inv_hw                # (C, 1)
    h = jnp.sum(pooled * w1_ref[...], axis=0, keepdims=True) + b1_ref[...]  # (1, Cr)
    h = jnp.maximum(h, 0.0)
    cse_logit = jnp.sum(h * w2t_ref[...], axis=1, keepdims=True) + b2_ref[...]  # (C, 1)
    cse = jax.nn.sigmoid(cse_logit)                                     # (C, 1)

    # sSE: per-pixel gate = sigmoid(sum_c ws[c] * x[c, :] + bs).
    sse_logit = jnp.sum(xf * ws_ref[...], axis=0, keepdims=True) + bs_ref[...]  # (1, HW)
    sse = jax.nn.sigmoid(sse_logit)

    # out = x*cSE + x*sSE == x*(cSE+sSE); gates stay in f32 until the final cast.
    o_ref[0] = (xf * (cse + sse)).astype(o_ref.dtype)


# ----------------------------------------------------------------------------
# Streaming stage 1: channel sums over HW tiles + cSE MLP folded into finalize.
# ----------------------------------------------------------------------------
def _cse_gate_kernel(x_ref, w1_ref, b1_ref, w2t_ref, b2_ref, gate_ref, *,
                     hw, tile, inv_hw):
    t = pl.program_id(1)

    @pl.when(t == 0)
    def _():
        gate_ref[...] = jnp.zeros_like(gate_ref)

    xf = x_ref[0].astype(jnp.float32)                                   # (C, TILE)
    if hw % tile != 0:
        # Mask lanes past HW in the (possibly partial) last tile: OOB reads are
        # unspecified, so zero them before accumulating.
        lane = lax.broadcasted_iota(jnp.int32, xf.shape, 1)
        xf = jnp.where(t * tile + lane < hw, xf, 0.0)
    gate_ref[0] += jnp.sum(xf, axis=1, keepdims=True)                   # (C, 1)

    @pl.when(t == pl.num_programs(1) - 1)
    def _():
        # Finalize: average pool -> tiny MLP -> sigmoid, overwrite the sums
        # with the finished cSE gate (no extra XLA dispatch, no HBM round trip
        # for the raw sums).
        pooled = gate_ref[0] * inv_hw                                   # (C, 1)
        h = jnp.sum(pooled * w1_ref[...], axis=0, keepdims=True) + b1_ref[...]
        h = jnp.maximum(h, 0.0)
        logit = jnp.sum(h * w2t_ref[...], axis=1, keepdims=True) + b2_ref[...]
        gate_ref[0] = jax.nn.sigmoid(logit)                             # (C, 1)


# ----------------------------------------------------------------------------
# Streaming stage 2: apply the precomputed cSE gate and the in-kernel sSE gate.
# ----------------------------------------------------------------------------
def _scse_apply_kernel(x_ref, gate_ref, ws_ref, bs_ref, o_ref):
    xf = x_ref[0].astype(jnp.float32)                                   # (C, TILE)
    sse_logit = jnp.sum(xf * ws_ref[...], axis=0, keepdims=True) + bs_ref[...]
    sse = jax.nn.sigmoid(sse_logit)                                     # (1, TILE)
    # Gates kept in f32; OOB lanes of a partial tile are dropped on store.
    o_ref[0] = (xf * (gate_ref[0] + sse)).astype(o_ref.dtype)


def _pick_tile(hw, c, max_block_bytes):
    """Largest multiple-of-128 lane tile such that a (C, TILE) f32 working
    block stays under max_block_bytes.  The last (possibly partial) tile is
    masked in-kernel, so TILE is NOT required to divide HW."""
    cap = max_block_bytes // max(1, c * 4)
    cap = max(128, (cap // 128) * 128)
    hw_padded = pl.cdiv(hw, 128) * 128
    return int(min(cap, hw_padded))


def scse_attention(x_nchw, w1, b1, w2, b2, ws, bs, *,
                   force_streaming=False,
                   max_block_bytes=2 * 1024 * 1024,
                   fused_slab_bytes=2 * 1024 * 1024):
    """SCSE forward.  x_nchw: (B, C, H, W).  1x1-conv weights as matmul mats:
       w1 (C, Cr), b1 (1, Cr), w2 (Cr, C), b2 (1, C), ws (C, 1), bs (1, 1)."""
    B, C, H, W = x_nchw.shape
    HW = H * W
    f32 = jnp.float32
    Cr = w1.shape[1]

    # NCHW is already (B, C, HW)-contiguous: this reshape is free (no HBM pass).
    x = x_nchw.reshape(B, C, HW)

    # Weight orientation chosen so every in-kernel reduction matches the native
    # sublane/lane layout (no in-kernel transposes of tiny tensors).
    w1f = w1.astype(f32)                    # (C, Cr)
    b1f = b1.reshape(1, Cr).astype(f32)     # (1, Cr)
    w2tf = w2.astype(f32).T                 # (C, Cr)   (w2 is (Cr, C))
    b2f = b2.reshape(C, 1).astype(f32)      # (C, 1)
    wsf = ws.reshape(C, 1).astype(f32)      # (C, 1)
    bsf = bs.reshape(1, 1).astype(f32)      # (1, 1)

    # ---- Fused single-kernel path: per-batch slab resident in VMEM. --------
    # Threshold sized for v7x (64 MiB physical / 32 MiB scoped VMEM): the f32
    # working slab plus double-buffered in/out blocks stays well inside 32 MiB.
    if (not force_streaming) and (C * HW * 4 <= fused_slab_bytes):
        out = pl.pallas_call(
            functools.partial(_scse_fused_kernel, inv_hw=1.0 / HW),
            out_shape=jax.ShapeDtypeStruct((B, C, HW), x.dtype),
            grid_spec=pltpu.PrefetchScalarGridSpec(
                num_scalar_prefetch=0,
                grid=(B,),
                in_specs=[
                    pl.BlockSpec((1, C, HW), lambda b: (b, 0, 0)),   # x slab
                    pl.BlockSpec((C, Cr), lambda b: (0, 0)),         # w1
                    pl.BlockSpec((1, Cr), lambda b: (0, 0)),         # b1
                    pl.BlockSpec((C, Cr), lambda b: (0, 0)),         # w2^T
                    pl.BlockSpec((C, 1), lambda b: (0, 0)),          # b2
                    pl.BlockSpec((C, 1), lambda b: (0, 0)),          # ws
                    pl.BlockSpec((1, 1), lambda b: (0, 0)),          # bs
                ],
                out_specs=pl.BlockSpec((1, C, HW), lambda b: (b, 0, 0)),
            ),
            compiler_params=pltpu.CompilerParams(
                dimension_semantics=("parallel",),
                vmem_limit_bytes=32 * 1024 * 1024,
            ),
        )(x, w1f, b1f, w2tf, b2f, wsf, bsf)
        return out.reshape(B, C, H, W)

    # ---- Streaming fallback: two lane-tiled passes over (B, C, HW). --------
    TILE = _pick_tile(HW, C, max_block_bytes)
    n_tiles = pl.cdiv(HW, TILE)

    # Stage 1: channel sums + in-kernel cSE MLP -> finished (B, C, 1) gate.
    gate = pl.pallas_call(
        functools.partial(_cse_gate_kernel, hw=HW, tile=TILE, inv_hw=1.0 / HW),
        out_shape=jax.ShapeDtypeStruct((B, C, 1), f32),
        grid_spec=pltpu.PrefetchScalarGridSpec(
            num_scalar_prefetch=0,
            grid=(B, n_tiles),
            in_specs=[
                pl.BlockSpec((1, C, TILE), lambda b, t: (b, 0, t)),  # x
                pl.BlockSpec((C, Cr), lambda b, t: (0, 0)),          # w1
                pl.BlockSpec((1, Cr), lambda b, t: (0, 0)),          # b1
                pl.BlockSpec((C, Cr), lambda b, t: (0, 0)),          # w2^T
                pl.BlockSpec((C, 1), lambda b, t: (0, 0)),           # b2
            ],
            out_specs=pl.BlockSpec((1, C, 1), lambda b, t: (b, 0, 0)),
        ),
        compiler_params=pltpu.CompilerParams(
            dimension_semantics=("parallel", "arbitrary"),
            vmem_limit_bytes=32 * 1024 * 1024,
        ),
    )(x, w1f, b1f, w2tf, b2f)

    # Stage 2: apply gates; lane-dense tiles, both axes parallel (megacore).
    out = pl.pallas_call(
        _scse_apply_kernel,
        out_shape=jax.ShapeDtypeStruct((B, C, HW), x.dtype),
        grid_spec=pltpu.PrefetchScalarGridSpec(
            num_scalar_prefetch=0,
            grid=(B, n_tiles),
            in_specs=[
                pl.BlockSpec((1, C, TILE), lambda b, t: (b, 0, t)),  # x
                pl.BlockSpec((1, C, 1), lambda b, t: (b, 0, 0)),     # cSE gate
                pl.BlockSpec((C, 1), lambda b, t: (0, 0)),           # ws
                pl.BlockSpec((1, 1), lambda b, t: (0, 0)),           # bs
            ],
            out_specs=pl.BlockSpec((1, C, TILE), lambda b, t: (b, 0, t)),
        ),
        compiler_params=pltpu.CompilerParams(
            dimension_semantics=("parallel", "parallel"),
            vmem_limit_bytes=32 * 1024 * 1024,
        ),
    )(x, gate, wsf, bsf)

    return out.reshape(B, C, H, W)


def scse_reference(x_nchw, w1, b1, w2, b2, ws, bs):
    """Pure-JAX reference matching the PyTorch SCSEModule forward (f32 math)."""
    hi = lax.Precision.HIGHEST
    x = x_nchw.astype(jnp.float32)                                   # (B, C, H, W)
    pooled = jnp.mean(x, axis=(2, 3))                                # (B, C)
    h = jnp.maximum(jnp.dot(pooled, w1, precision=hi) + b1, 0.0)     # (B, Cr)
    cse = jax.nn.sigmoid(jnp.dot(h, w2, precision=hi) + b2)          # (B, C)
    cse = cse[:, :, None, None]                                      # (B, C, 1, 1)
    sse_logit = jnp.einsum('bchw,co->bohw', x, ws, precision=hi) + bs[0, 0]
    sse = jax.nn.sigmoid(sse_logit)                                  # (B, 1, H, W)
    return x * cse + x * sse


if __name__ == "__main__":
    # Attention(name='scse', in_channels=32, reduction=16)
    B, C, H, W = 2, 32, 16, 16
    reduction = 16
    Cr = max(1, C // reduction)

    key = jax.random.PRNGKey(0)
    kx, k1, k2, k3, k4, k5, k6, kx2 = jax.random.split(key, 8)

    x = jax.random.normal(kx, (B, C, H, W), dtype=jnp.float32)

    # 1x1 conv weights expressed as matmul matrices.
    w1 = jax.random.normal(k1, (C, Cr), dtype=jnp.float32) * 0.1   # cSE conv1: C -> C/r
    b1 = jax.random.normal(k2, (1, Cr), dtype=jnp.float32) * 0.1
    w2 = jax.random.normal(k3, (Cr, C), dtype=jnp.float32) * 0.1   # cSE conv2: C/r -> C
    b2 = jax.random.normal(k4, (1, C), dtype=jnp.float32) * 0.1
    ws = jax.random.normal(k5, (C, 1), dtype=jnp.float32) * 0.1    # sSE conv: C -> 1
    bs = jax.random.normal(k6, (1, 1), dtype=jnp.float32) * 0.1

    # 1) Fused single-kernel path (slab resident in VMEM).
    out = jax.block_until_ready(scse_attention(x, w1, b1, w2, b2, ws, bs))
    ref = scse_reference(x, w1, b1, w2, b2, ws, bs)
    assert out.shape == (B, C, H, W)
    assert jnp.allclose(out, ref, atol=1e-4, rtol=1e-4), "fused path mismatch"

    # 2) Streaming two-kernel path, exercising a non-128-divisible HW (=196)
    #    with a partial, masked last tile (TILE=128 forced via max_block_bytes).
    x2 = jax.random.normal(kx2, (B, C, 14, 14), dtype=jnp.float32)
    out2 = jax.block_until_ready(
        scse_attention(x2, w1, b1, w2, b2, ws, bs,
                       force_streaming=True, max_block_bytes=16 * 1024))
    ref2 = scse_reference(x2, w1, b1, w2, b2, ws, bs)
    assert out2.shape == x2.shape
    assert jnp.allclose(out2, ref2, atol=1e-4, rtol=1e-4), "streaming path mismatch"

    print("KERNEL_OK")
</pallas_src>

<mosaic_0001>
module attributes {stable_mosaic.version = 11 : i64} {
  func.func @_scse_fused_kernel(%arg0: i32, %arg1: memref<1x32x256xf32, #tpu.memory_space<vmem>>, %arg2: memref<32x2xf32, #tpu.memory_space<vmem>>, %arg3: memref<1x2xf32, #tpu.memory_space<vmem>>, %arg4: memref<32x2xf32, #tpu.memory_space<vmem>>, %arg5: memref<32x1xf32, #tpu.memory_space<vmem>>, %arg6: memref<32x1xf32, #tpu.memory_space<vmem>>, %arg7: memref<1x1xf32, #tpu.memory_space<vmem>>, %arg8: memref<1x32x256xf32, #tpu.memory_space<vmem>>) attributes {dimension_semantics = [#tpu.dimension_semantics<parallel>], iteration_bounds = array<i64: 2>, scalar_prefetch = 0 : i64, scratch_operands = 0 : i64, tpu.core_type = #tpu.core_type<tc>, window_params = [{transform_indices = @transform_0, window_bounds = array<i64: 1, 32, 256>}, {pipeline_mode = #tpu.pipeline_mode<synchronous>, transform_indices = @transform_1, window_bounds = array<i64: 32, 2>}, {pipeline_mode = #tpu.pipeline_mode<synchronous>, transform_indices = @transform_2, window_bounds = array<i64: 1, 2>}, {pipeline_mode = #tpu.pipeline_mode<synchronous>, transform_indices = @transform_3, window_bounds = array<i64: 32, 2>}, {pipeline_mode = #tpu.pipeline_mode<synchronous>, transform_indices = @transform_4, window_bounds = array<i64: 32, 1>}, {pipeline_mode = #tpu.pipeline_mode<synchronous>, transform_indices = @transform_5, window_bounds = array<i64: 32, 1>}, {pipeline_mode = #tpu.pipeline_mode<synchronous>, transform_indices = @transform_6, window_bounds = array<i64: 1, 1>}, {transform_indices = @transform_7, window_bounds = array<i64: 1, 32, 256>}]} {
    %c0 = arith.constant 0 : index
    %c0_0 = arith.constant 0 : index
    %c0_1 = arith.constant 0 : index
    %0 = vector.load %arg1[%c0, %c0_0, %c0_1] : memref<1x32x256xf32, #tpu.memory_space<vmem>>, vector<1x32x256xf32>
    %1 = vector.shape_cast %0 : vector<1x32x256xf32> to vector<32x256xf32>
    %cst = arith.constant dense<0.000000e+00> : vector<32xf32>
    %2 = vector.multi_reduction <add>, %1, %cst [1] : vector<32x256xf32> to vector<32xf32>
    %3 = vector.shape_cast %2 : vector<32xf32> to vector<32x1xf32>
    %cst_2 = arith.constant 3.906250e-03 : f32
    %4 = vector.broadcast %cst_2 : f32 to vector<32x1xf32>
    %5 = arith.mulf %3, %4 : vector<32x1xf32>
    %c0_3 = arith.constant 0 : index
    %c0_4 = arith.constant 0 : index
    %6 = vector.load %arg2[%c0_3, %c0_4] : memref<32x2xf32, #tpu.memory_space<vmem>>, vector<32x2xf32>
    %7 = vector.broadcast %5 : vector<32x1xf32> to vector<32x2xf32>
    %8 = arith.mulf %7, %6 : vector<32x2xf32>
    %cst_5 = arith.constant dense<0.000000e+00> : vector<2xf32>
    %9 = vector.multi_reduction <add>, %8, %cst_5 [0] : vector<32x2xf32> to vector<2xf32>
    %10 = vector.shape_cast %9 : vector<2xf32> to vector<1x2xf32>
    %c0_6 = arith.constant 0 : index
    %c0_7 = arith.constant 0 : index
    %11 = vector.load %arg3[%c0_6, %c0_7] : memref<1x2xf32, #tpu.memory_space<vmem>>, vector<1x2xf32>
    %12 = arith.addf %10, %11 : vector<1x2xf32>
    %cst_8 = arith.constant 0.000000e+00 : f32
    %13 = vector.broadcast %cst_8 : f32 to vector<1x2xf32>
    %14 = arith.maximumf %12, %13 : vector<1x2xf32>
    %c0_9 = arith.constant 0 : index
    %c0_10 = arith.constant 0 : index
    %15 = vector.load %arg4[%c0_9, %c0_10] : memref<32x2xf32, #tpu.memory_space<vmem>>, vector<32x2xf32>
    %16 = vector.broadcast %14 : vector<1x2xf32> to vector<32x2xf32>
    %17 = arith.mulf %16, %15 : vector<32x2xf32>
    %cst_11 = arith.constant dense<0.000000e+00> : vector<32xf32>
    %18 = vector.multi_reduction <add>, %17, %cst_11 [1] : vector<32x2xf32> to vector<32xf32>
    %19 = vector.shape_cast %18 : vector<32xf32> to vector<32x1xf32>
    %c0_12 = arith.constant 0 : index
    %c0_13 = arith.constant 0 : index
    %20 = vector.load %arg5[%c0_12, %c0_13] : memref<32x1xf32, #tpu.memory_space<vmem>>, vector<32x1xf32>
    %21 = arith.addf %19, %20 : vector<32x1xf32>
    %22 = arith.negf %21 : vector<32x1xf32>
    %23 = math.exp %22 : vector<32x1xf32>
    %cst_14 = arith.constant 1.000000e+00 : f32
    %24 = vector.broadcast %cst_14 : f32 to vector<32x1xf32>
    %25 = arith.addf %24, %23 : vector<32x1xf32>
    %26 = arith.divf %24, %25 : vector<32x1xf32>
    %c0_15 = arith.constant 0 : index
    %c0_16 = arith.constant 0 : index
    %27 = vector.load %arg6[%c0_15, %c0_16] : memref<32x1xf32, #tpu.memory_space<vmem>>, vector<32x1xf32>
    %28 = vector.broadcast %27 : vector<32x1xf32> to vector<32x256xf32>
    %29 = arith.mulf %1, %28 : vector<32x256xf32>
    %cst_17 = arith.constant dense<0.000000e+00> : vector<256xf32>
    %30 = vector.multi_reduction <add>, %29, %cst_17 [0] : vector<32x256xf32> to vector<256xf32>
    %31 = vector.shape_cast %30 : vector<256xf32> to vector<1x256xf32>
    %c0_18 = arith.constant 0 : index
    %c0_19 = arith.constant 0 : index
    %32 = vector.load %arg7[%c0_18, %c0_19] : memref<1x1xf32, #tpu.memory_space<vmem>>, vector<1x1xf32>
    %33 = vector.broadcast %32 : vector<1x1xf32> to vector<1x256xf32>
    %34 = arith.addf %31, %33 : vector<1x256xf32>
    %35 = arith.negf %34 : vector<1x256xf32>
    %36 = math.exp %35 : vector<1x256xf32>
    %cst_20 = arith.constant 1.000000e+00 : f32
    %37 = vector.broadcast %cst_20 : f32 to vector<1x256xf32>
    %38 = arith.addf %37, %36 : vector<1x256xf32>
    %39 = arith.divf %37, %38 : vector<1x256xf32>
    %40 = vector.broadcast %26 : vector<32x1xf32> to vector<32x256xf32>
    %41 = vector.broadcast %39 : vector<1x256xf32> to vector<32x256xf32>
    %42 = arith.addf %40, %41 : vector<32x256xf32>
    %43 = arith.mulf %1, %42 : vector<32x256xf32>
    %c0_21 = arith.constant 0 : index
    %c0_22 = arith.constant 0 : index
    %c0_23 = arith.constant 0 : index
    %44 = vector.load %arg8[%c0_21, %c0_22, %c0_23] : memref<1x32x256xf32, #tpu.memory_space<vmem>>, vector<1x32x256xf32>
    %45 = vector.shape_cast %44 : vector<1x32x256xf32> to vector<32x256xf32>
    %46 = vector.shape_cast %43 : vector<32x256xf32> to vector<1x32x256xf32>
    tpu.vector_store %arg8[%c0_21, %c0_22, %c0_23], %46 {strides = array<i32>} : memref<1x32x256xf32, #tpu.memory_space<vmem>>, vector<1x32x256xf32>,
    return
  }
  func.func @transform_0(%arg0: i32) -> (i32, i32, i32) {
    %c0_i32 = arith.constant 0 : i32
    %c0_i32_0 = arith.constant 0 : i32
    %c0_i32_1 = arith.constant 0 : i32
    return %arg0, %c0_i32, %c0_i32_0 : i32, i32, i32
  }
  func.func @transform_1(%arg0: i32) -> (i32, i32) {
    %c0_i32 = arith.constant 0 : i32
    %c0_i32_0 = arith.constant 0 : i32
    %c0_i32_1 = arith.constant 0 : i32
    return %c0_i32, %c0_i32_0 : i32, i32
  }
  func.func @transform_2(%arg0: i32) -> (i32, i32) {
    %c0_i32 = arith.constant 0 : i32
    %c0_i32_0 = arith.constant 0 : i32
    %c0_i32_1 = arith.constant 0 : i32
    return %c0_i32, %c0_i32_0 : i32, i32
  }
  func.func @transform_3(%arg0: i32) -> (i32, i32) {
    %c0_i32 = arith.constant 0 : i32
    %c0_i32_0 = arith.constant 0 : i32
    %c0_i32_1 = arith.constant 0 : i32
    return %c0_i32, %c0_i32_0 : i32, i32
  }
  func.func @transform_4(%arg0: i32) -> (i32, i32) {
    %c0_i32 = arith.constant 0 : i32
    %c0_i32_0 = arith.constant 0 : i32
    %c0_i32_1 = arith.constant 0 : i32
    return %c0_i32, %c0_i32_0 : i32, i32
  }
  func.func @transform_5(%arg0: i32) -> (i32, i32) {
    %c0_i32 = arith.constant 0 : i32
    %c0_i32_0 = arith.constant 0 : i32
    %c0_i32_1 = arith.constant 0 : i32
    return %c0_i32, %c0_i32_0 : i32, i32
  }
  func.func @transform_6(%arg0: i32) -> (i32, i32) {
    %c0_i32 = arith.constant 0 : i32
    %c0_i32_0 = arith.constant 0 : i32
    %c0_i32_1 = arith.constant 0 : i32
    return %c0_i32, %c0_i32_0 : i32, i32
  }
  func.func @transform_7(%arg0: i32) -> (i32, i32, i32) {
    %c0_i32 = arith.constant 0 : i32
    %c0_i32_0 = arith.constant 0 : i32
    %c0_i32_1 = arith.constant 0 : i32
    return %arg0, %c0_i32, %c0_i32_0 : i32, i32, i32
  }
}

</mosaic_0001>

<bundles_post_ra>
// kernel: tpu_custom_call.1
= control target key start
LH: loop header
LB: loop body
LE: loop exit
PB: predicated region body
PF: predicated region fallthrough
CT: control target
= control target key end

     0   :  { %s990_s0 = inlined_call_operand.vmem [shape: f32[2,32,256], index: 0, kind: input, shape index: {}]   ;;  %s991_s1 = inlined_call_operand.vmem [shape: f32[32,2], index: 1, kind: input, shape index: {}]   ;;  %s992_s2 = inlined_call_operand.vmem [shape: f32[1,2], index: 2, kind: input, shape index: {}]   ;;  %s993_s3 = inlined_call_operand.vmem [shape: f32[32,2], index: 3, kind: input, shape index: {}]   ;;  %s994_s4 = inlined_call_operand.vmem [shape: f32[32,1], index: 4, kind: input, shape index: {}]   ;;  %s995_s5 = inlined_call_operand.vmem [shape: f32[32,1], index: 5, kind: input, shape index: {}]   ;;  %s996_s6 = inlined_call_operand.<no memory space> [shape: f32[1,1], index: 6, kind: input, shape index: {}]   ;;  %s997_s7 = inlined_call_operand.hbm [shape: f32[2,32,256], index: 7, kind: output, shape index: {}]  }
   0x1   :  { %v12_v0 = vstv %s996_s6 }
   0x2   :  { %13 = vst [vmem:[#allocation2] sm:$0x1] %v12_v0 }
   0x3   :  { %14 = vsyncpa [#allocation4], 0 }
   0x4   :  { %16 = vsyncpa [#allocation4 + $0x1], 0  ;;  %s777_s26 = smov 0   ;;  %s779_s27 = smov 0  }
   0x5   :  { %s781_s28 = smov 0   ;;  %s783_s29 = smov 0  }
   0x6 LB: > { %s798_s6 = sadd.s32 4294967295, %s728_s29   ;;  %s578_s30 = sadd.s32 4294967294, %s728_s29   ;;  %s728_s29 = sphi %s783_s29, %s1003_s29   ;;  %s724_s28 = sphi %s781_s28, %s1002_s28   ;;  %s720_s27 = sphi %s779_s27, %s1001_s27   ;;  %s716_s26 = sphi %s777_s26, %s1000_s26  }
   0x7   : > { %s802_s8 = sadd.s32 1, %s728_s29   ;;  %s181_s9 = sadd.s32 1, %s724_s28 }
   0x8   : > { %s178_s10 = ssub.s32 %s728_s29, %s802_s8  ;;  %p191_p0 = scmp.ne.s32.totalorder %s724_s28, %s720_s27 }
   0x9   : > { %p179_p1 = scmp.eq.s32.totalorder %s178_s10, 0  ;;  %p192_p2 = scmp.eq.s32.totalorder %s798_s6, 1 }
   0xa   : > { %p197_p3 = scmp.ne.s32.totalorder %s720_s27, %s716_s26  ;;  %p198_p4 = scmp.eq.s32.totalorder %s578_s30, 1 }
   0xb   : > { %s813_s11 = scalar_select %p179_p1, %s724_s28, %s181_s9  }
   0xc   : > { %p815_p5 = por %p192_p2, %p191_p0  ;;  %p819_p6 = por %p198_p4, %p197_p3 }
   0xd   : > { %p581_p7 = scmp.ge.s32.totalorder %s728_s29, 1  ;;  %p242_p8 = scmp.lt.s32.totalorder %s728_s29, 3 }
   0xf   : > { %p243_p9 = pnand %p581_p7, %p242_p8 }
  0x10   : > { %p274_p10 = scmp.lt.s32.totalorder (!%p243_p9), %s798_s6, 1  ;;  %v730_v13 = vmov (!%p243_p9), 0   ;;  %v303_v17 = vld [vmem:[%s991_s1] sm:$0xff] (!%p243_p9)  ;;  %v305_v19 = vld [vmem:[%s991_s1 + $0x10] sm:$0xff] (!%p243_p9)  ;;  %v304_v20 = vld [vmem:[%s991_s1 + $0x8] sm:$0xff] (!%p243_p9)  ;;  %vm311_vm0 = vcmask (!%p243_p9), 15360   ;;  %v332_v40 = vlaneseq (!%p243_p9) }
  0x11   : > { %246 = sbr.rel (%p243_p9) target bundleno = 539 (0x21b), region = 48  ;;  %641 = vset.pattern.permute.xlu1 (!%p243_p9), %v730_v13  ;;  %640 = vset.pattern.permute.xlu0 (!%p243_p9), %v730_v13  ;;  %v306_v24 = vld [vmem:[%s991_s1 + $0x18] sm:$0xff] (!%p243_p9)  ;;  %v325_v44 = vld [vmem:[%s992_s2] sm:$0x1] (!%p243_p9)  ;;  %v329_v49 = vld [vmem:[%s993_s3 + $0x8] sm:$0xff] (!%p243_p9)  ;;  %s271_s23 = sand.u32 (!%p243_p9), 1, %s720_s27  }
  0x12   : > { %v870_v43 = vshrl.u32 (!%p243_p9), %v332_v40, 7  ;;  %v328_v50 = vld [vmem:[%s993_s3] sm:$0xff] (!%p243_p9)  ;;  %v331_v52 = vld [vmem:[%s993_s3 + $0x18] sm:$0xff] (!%p243_p9)  ;;  %v330_v53 = vld [vmem:[%s993_s3 + $0x10] sm:$0xff] (!%p243_p9)  ;;  %s582_s24 = sshll.u32 (!%p243_p9), %s271_s23, 6  ;;  %s597_s30 = sshll.u32 (!%p243_p9), %s798_s6, 10 }
  0x13   : > { %v385_v62 = vld [vmem:[%s995_s5 + $0x8] sm:$0xff] (!%p243_p9)  ;;  %v386_v63 = vld [vmem:[%s995_s5 + $0x10] sm:$0xff] (!%p243_p9)  ;;  %v384_v0 = vld [vmem:[%s995_s5] sm:$0xff] (!%p243_p9)  ;;  %s273_s25 = scalar_lea.vmem (!%p243_p9), [#allocation3], %s582_s24  ;;  %s731_s17 = smov (!%p243_p9), [#allocation3]  }
  0x14   : > { %v334_v47 = vsub.s32 (!%p243_p9), 0, %v870_v43  ;;  %s516_s9 = sshll.u32 (!%p243_p9), %s273_s25, 4  ;;  %s943_s9 = int_to_ptr.vmem [resolvable:$true] %s516_s9 }
  0x15   : > { %s666_s16 = scalar_lea.vmem (!%p243_p9), %s943_s9, 1024 }
  0x16   : > { %p667_p11 = scmp.ne.s32.totalorder (!%p243_p9), %s943_s9, %s666_s16 }
  0x18   : > { %s275_s14 = scalar_select %p274_p10, %s798_s6, 1 }
  0x19   : > { %s949_s6 = scalar_lea.sflag [#allocation4], %s271_s23  ;;  %p668_p12 = pnand %p667_p11, %p815_p5 }
  0x1a   : > { %s596_s15 = sshll.u32 %s275_s14, 6 }
  0x1b   : > { %s278_s18 = scalar_lea.vmem %s990_s0, %s596_s15  ;;  %s941_s15 = scalar_lea.hbm %s997_s7, %s597_s30 }
  0x1c   : > { %v830_v1 = vld [vmem:[%s278_s18] sm:$0xff]  ;;  %v832_v2 = vld [vmem:[%s278_s18 + $0x8] sm:$0xff]  ;;  %v840_v6 = vld [vmem:[%s278_s18 + $0x10] sm:$0xff]  ;;  %p669_p13 = pneg %p668_p12 }
  0x1d   : > { %v834_v3 = vld [vmem:[%s278_s18 + $0x20] sm:$0xff]  ;;  %v287_v4 = vadd.f32 %v832_v2, %v830_v1  ;;  %v838_v5 = vld [vmem:[%s278_s18 + $0x28] sm:$0xff]  ;;  %v842_v7 = vld [vmem:[%s278_s18 + $0x18] sm:$0xff] }
  0x1e   : > { %v293_v8 = vadd.f32 %v838_v5, %v834_v3  ;;  %v846_v9 = vld [vmem:[%s278_s18 + $0x30] sm:$0xff]  ;;  %v848_v10 = vld [vmem:[%s278_s18 + $0x38] sm:$0xff]  ;;  %v290_v11 = vadd.f32 %v842_v7, %v840_v6  ;;  %s670_s18 = sshll.u32 %s731_s17, 4  ;;  %s671_s18 = int_to_ptr.vmem [resolvable:$false] %s670_s18 }
  0x1f   : > { %288 = vadd.xlane.f32.xlu0 %v287_v4  ;;  %v296_v12 = vadd.f32 %v848_v10, %v846_v9  ;;  %v387_v4 = vld [vmem:[%s995_s5 + $0x18] sm:$0xff]  ;;  %s672_s19 = scalar_lea.vmem %s671_s18, 2048  ;;  %p673_p0 = scmp.lt.s32.totalorder %s943_s9, %s671_s18 }
  0x20   : > { %294 = vadd.xlane.f32.xlu1 %v293_v8  ;;  %v434_v8 = vld [vmem:[#allocation2] sm:$0x1]  ;;  %p674_p1 = scmp.lt.s32.totalorder %s672_s19, %s666_s16 }
  0x22   : > { %p675_p2 = por %p674_p1, %p673_p0 }
  0x23   : > { %291 = vadd.xlane.f32.xlu0 %v290_v11  ;;  %v353_v11 = vld [vmem:[%s994_s4 + $0x8] sm:$0xff] }
  0x24   : > { %297 = vadd.xlane.f32.xlu1 %v296_v12  ;;  %v352_v12 = vld [vmem:[%s994_s4] sm:$0xff]  ;;  %p676_p3 = pnand %p675_p2, %p669_p13 }
  0xac   : > { %v289_v14 = vpop.xlane.xlu0 %288 }
  0xad   : > { %v299_v15 = vmul.f32 0.00390625, %v289_v14  ;;  %v295_v16 = vpop.xlane.xlu1 %294 }
  0xae   : > { %v301_v18 = vmul.f32 0.00390625, %v295_v16 }
  0xaf   : > { %v307_v22 = vmul.f32 %v303_v17, %v299_v15  ;;  %v354_v17 = vld [vmem:[%s994_s4 + $0x10] sm:$0xff] }
  0xb0   : > { %v292_v21 = vpop.xlane.xlu0 %291  ;;  %v309_v27 = vmul.f32 %v305_v19, %v301_v18 }
  0xb1   : > { %v300_v23 = vmul.f32 0.00390625, %v292_v21  ;;  %v298_v25 = vpop.xlane.xlu1 %297  ;;  %v312_v30 = vsel %vm311_vm0, %v307_v22, 0.0 }
  0xb2   : > { %v302_v26 = vmul.f32 0.00390625, %v298_v25  ;;  %v315_v33 = vsel %vm311_vm0, %v309_v27, 0.0 }
  0xb3   : > { %v308_v28 = vmul.f32 %v304_v20, %v300_v23  ;;  %v355_v20 = vld [vmem:[%s994_s4 + $0x18] sm:$0xff] }
  0xb4   : > { %v310_v29 = vmul.f32 %v306_v24, %v302_v26 }
  0xb5   : > { %v313_v31 = vsel %vm311_vm0, %v308_v28, 0.0 }
  0xb6   : > { %v314_v32 = vadd.f32 %v313_v31, %v312_v30  ;;  %v317_v34 = vsel %vm311_vm0, %v310_v29, 0.0 }
  0xb8   : > { %v316_v35 = vadd.f32 %v315_v33, %v314_v32 }
  0xba   : > { %v318_v36 = vadd.f32 %v317_v34, %v316_v35 }
  0xbc   : > { %v319_v37 = vrot.slane %v318_v36, 4 }
  0xbe   : > { %v320_v38 = vadd.f32 %v319_v37, %v318_v36 }
  0xc0   : > { %v321_v39 = vrot.slane %v320_v38, 2 }
  0xc2   : > { %v322_v41 = vadd.f32 %v321_v39, %v320_v38 }
  0xc4   : > { %v323_v42 = vrot.slane %v322_v41, 1 }
  0xc6   : > { %v324_v45 = vadd.f32 %v323_v42, %v322_v41 }
  0xc8   : > { %v326_v46 = vadd.f32 %v325_v44, %v324_v45 }
  0xca   : > { %v327_v48 = vmax.f32 %v326_v46, 0.0 }
  0xcc   : > { %v335_v51 = vrot.slane %v327_v48, %v334_v47 }
  0xce   : > { %v337_v54 = vmul.f32 %v335_v51, %v329_v49  ;;  %v336_v55 = vmul.f32 %v335_v51, %v328_v50  ;;  %v339_v58 = vmul.f32 %v335_v51, %v331_v52  ;;  %v338_v59 = vmul.f32 %v335_v51, %v330_v53 }
  0xd0   : > { %v343_v56 = vsel %vm311_vm0, %v337_v54, 0.0  ;;  %v340_v57 = vsel %vm311_vm0, %v336_v55, 0.0  ;;  %v349_v60 = vsel %vm311_vm0, %v339_v58, 0.0  ;;  %v346_v61 = vsel %vm311_vm0, %v338_v59, 0.0 }
  0xd1   : > { %344 = vadd.xlane.f32.xlu1 %v343_v56  ;;  %341 = vadd.xlane.f32.xlu0 %v340_v57 }
  0xd5   : > { %350 = vadd.xlane.f32.xlu1 %v349_v60  ;;  %347 = vadd.xlane.f32.xlu0 %v346_v61 }
  0xe6   : > { %395 = vperm.xlu1 %641, %v385_v62  }
  0xea   : > { %400 = vperm.xlu1 %641, %v386_v63  }
  0xeb   : > { %390 = vperm.xlu0 %640, %v384_v0  }
  0xee   : > { %405 = vperm.xlu1 %641, %v387_v4  }
  0xf2   : > { %437 = vperm.xlu1 %641, %v434_v8  }
 0x15e   : > { %v345_v13 = vpop.xlane.xlu1 %344  ;;  %v342_v14 = vpop.xlane.xlu0 %341 }
 0x15f   : > { %v357_v15 = vadd.f32 %v353_v11, %v345_v13  ;;  %v356_v16 = vadd.f32 %v352_v12, %v342_v14 }
 0x161   : > { %v586_v18 = vmul.f32 -1.442695, %v357_v15  ;;  %v585_v19 = vmul.f32 -1.442695, %v356_v16 }
 0x162   : > { %v351_v21 = vpop.xlane.xlu1 %350  ;;  %v348_v22 = vpop.xlane.xlu0 %347 }
 0x163   : > { %642 = vpow2.f32 %v586_v18  ;;  %v358_v23 = vadd.f32 %v354_v17, %v348_v22  ;;  %v359_v24 = vadd.f32 %v355_v20, %v351_v21 }
 0x164   : > { %644 = vpow2.f32 %v585_v19 }
 0x165   : > { %v587_v25 = vmul.f32 -1.442695, %v358_v23  ;;  %v588_v26 = vmul.f32 -1.442695, %v359_v24 }
 0x166   : > { %v396_v39 = vpop.permute.xlu1 %395 }
 0x167   : > { %646 = vpow2.f32 %v587_v25  ;;  %v410_v42 = vmul.f32 %v396_v39, %v840_v6  ;;  %v411_v45 = vmul.f32 %v396_v39, %v842_v7 }
 0x168   : > { %648 = vpow2.f32 %v588_v26 }
 0x16a   : > { %v391_v40 = vpop.permute.xlu0 %390  ;;  %v401_v41 = vpop.permute.xlu1 %400 }
 0x16b   : > { %v408_v44 = vmul.f32 %v391_v40, %v830_v1  ;;  %v409_v46 = vmul.f32 %v391_v40, %v832_v2  ;;  %v412_v48 = vmul.f32 %v401_v41, %v834_v3  ;;  %v413_v50 = vmul.f32 %v401_v41, %v838_v5 }
 0x16d   : > { %v643_v27 = vpop.eup %642  ;;  %v416_v49 = vadd.f32 %v410_v42, %v408_v44  ;;  %v425_v51 = vadd.f32 %v411_v45, %v409_v46 }
 0x16e   : > { %v645_v28 = vpop.eup %644  ;;  %v373_v30 = vadd.f32 1.0, %v643_v27  ;;  %v406_v52 = vpop.permute.xlu1 %405 }
 0x16f   : > { %v372_v29 = vadd.f32 1.0, %v645_v28  ;;  %v417_v53 = vadd.f32 %v416_v49, %v412_v48  ;;  %v414_v54 = vmul.f32 %v406_v52, %v846_v9  ;;  %v426_v55 = vadd.f32 %v425_v51, %v413_v50 }
 0x170   : > { %v415_v56 = vmul.f32 %v406_v52, %v848_v10 }
 0x171   : > { %650 = vrcp.f32 %v372_v29  ;;  %v647_v31 = vpop.eup %646  ;;  %v418_v57 = vadd.f32 %v417_v53, %v414_v54 }
 0x172   : > { %652 = vrcp.f32 %v373_v30  ;;  %v374_v32 = vadd.f32 1.0, %v647_v31  ;;  %v649_v33 = vpop.eup %648  ;;  %v427_v58 = vadd.f32 %v426_v55, %v415_v56  ;;  %v438_v12 = vpop.permute.xlu1 %437 }
 0x173   : > { %v375_v34 = vadd.f32 1.0, %v649_v33  ;;  %v419_v59 = vrot.slane %v418_v57, 4  ;;  %v443_v15 = vrot.slane %v438_v12, %v334_v47 }
 0x174   : > { %654 = vrcp.f32 %v374_v32  ;;  %v428_v60 = vrot.slane %v427_v58, 4 }
 0x175   : > { %656 = vrcp.f32 %v375_v34  ;;  %v420_v61 = vadd.f32 %v419_v59, %v418_v57 }
 0x176   : > { %v429_v62 = vadd.f32 %v428_v60, %v427_v58 }
 0x177   : > { %v421_v63 = vrot.slane %v420_v61, 2 }
 0x178   : > { %v430_v0 = vrot.slane %v429_v62, 2 }
 0x179   : > { %v422_v4 = vadd.f32 %v421_v63, %v420_v61 }
 0x17a   : > { %v431_v8 = vadd.f32 %v430_v0, %v429_v62 }
 0x17b   : > { %v651_v35 = vpop.eup %650  ;;  %v423_v11 = vrot.slane %v422_v4, 1 }
 0x17c   : > { %460 = vperm.xlu1 %641, %v651_v35   ;;  %v653_v36 = vpop.eup %652  ;;  %v432_v13 = vrot.slane %v431_v8, 1 }
 0x17d   : > { %v424_v14 = vadd.f32 %v423_v11, %v422_v4 }
 0x17e   : > { %v655_v37 = vpop.eup %654  ;;  %v433_v16 = vadd.f32 %v432_v13, %v431_v8 }
 0x17f   : > { %v657_v38 = vpop.eup %656  ;;  %v444_v17 = vadd.f32 %v443_v15, %v424_v14 }
 0x180   : > { %465 = vperm.xlu1 %641, %v653_v36   ;;  %v445_v18 = vadd.f32 %v443_v15, %v433_v16 }
 0x181   : > { %v589_v19 = vmul.f32 -1.442695, %v444_v17 }
 0x182   : > { %v590_v20 = vmul.f32 -1.442695, %v445_v18 }
 0x183   : > { %658 = vpow2.f32 %v589_v19 }
 0x184   : > { %470 = vperm.xlu1 %641, %v655_v37   ;;  %660 = vpow2.f32 %v590_v20 }
 0x188   : > { %475 = vperm.xlu1 %641, %v657_v38  }
 0x18d   : > { %v659_v21 = vpop.eup %658 }
 0x18e   : > { %v661_v22 = vpop.eup %660  ;;  %v452_v23 = vadd.f32 1.0, %v659_v21 }
 0x18f   : > { %v453_v24 = vadd.f32 1.0, %v661_v22 }
 0x190   : > { %662 = vrcp.f32 %v452_v23 }
 0x191   : > { %664 = vrcp.f32 %v453_v24 }
 0x19a   : > { %v663_v25 = vpop.eup %662 }
 0x19b   : > { %v665_v43 = vpop.eup %664 }
 0x1fb   : > { %v461_v47 = vpop.permute.xlu1 %460 }
 0x1fc   : > { %v478_v26 = vadd.f32 %v663_v25, %v461_v47  ;;  %v479_v27 = vadd.f32 %v665_v43, %v461_v47 }
 0x1fe   : > { %v486_v28 = vmul.f32 %v478_v26, %v830_v1  ;;  %v487_v29 = vmul.f32 %v479_v27, %v832_v2 }
 0x1ff   : > { %v466_v30 = vpop.permute.xlu1 %465 }
 0x200   : > { %494 = vst [vmem:[%s273_s25] sm:$0xff] %v486_v28  ;;  %495 = vst [vmem:[%s273_s25 + $0x8] sm:$0xff] %v487_v29  ;;  %v480_v31 = vadd.f32 %v663_v25, %v466_v30  ;;  %v481_v32 = vadd.f32 %v665_v43, %v466_v30 }
 0x202   : > { %v488_v33 = vmul.f32 %v480_v31, %v840_v6  ;;  %v489_v34 = vmul.f32 %v481_v32, %v842_v7 }
 0x203   : > { %v471_v35 = vpop.permute.xlu1 %470 }
 0x204   : > { %496 = vst [vmem:[%s273_s25 + $0x10] sm:$0xff] %v488_v33  ;;  %497 = vst [vmem:[%s273_s25 + $0x18] sm:$0xff] %v489_v34  ;;  %v482_v36 = vadd.f32 %v663_v25, %v471_v35  ;;  %v483_v37 = vadd.f32 %v665_v43, %v471_v35 }
 0x206   : > { %v490_v1 = vmul.f32 %v482_v36, %v834_v3  ;;  %v491_v2 = vmul.f32 %v483_v37, %v838_v5 }
 0x207   : > { %v476_v38 = vpop.permute.xlu1 %475 }
 0x208   : > { %498 = vst [vmem:[%s273_s25 + $0x20] sm:$0xff] %v490_v1  ;;  %499 = vst [vmem:[%s273_s25 + $0x28] sm:$0xff] %v491_v2  ;;  %v484_v39 = vadd.f32 %v663_v25, %v476_v38  ;;  %v485_v6 = vadd.f32 %v665_v43, %v476_v38 }
 0x20a   : > { %v492_v3 = vmul.f32 %v484_v39, %v846_v9  ;;  %v493_v5 = vmul.f32 %v485_v6, %v848_v10 }
 0x20c   : > { %500 = vst [vmem:[%s273_s25 + $0x30] sm:$0xff] %v492_v3  ;;  %501 = vst [vmem:[%s273_s25 + $0x38] sm:$0xff] %v493_v5 }
 0x20d   : > { %679 = shalt.err (!%p676_p3)
}
 0x20e   : > { %s680_s20 = scalar_lea.hbm %s941_s15, 1024  ;;  %s684_s23 = scalar_lea.hbm %s997_s7, 2048 }
 0x20f   : > { %p681_p4 = scmp.ne.s32.totalorder %s941_s15, %s680_s20  ;;  %p685_p9 = scmp.lt.u32.totalorder %s941_s15, %s997_s7 }
 0x210   : > { %p686_p10 = scmp.lt.u32.totalorder %s684_s23, %s680_s20  ;;  %p688_p12 = scmp.lt.u32.totalorder %s680_s20, %s941_s15 }
 0x211   : > { %p682_p7 = pnand %p681_p4, %p815_p5 }
 0x212   : > { %p687_p11 = por %p686_p10, %p685_p9 }
 0x213   : > { %p683_p8 = pneg %p682_p7 }
 0x214   : > { %p689_p13 = por %p688_p12, %p687_p11 }
 0x216   : > { %p690_p0 = pnand %p689_p13, %p683_p8 }
 0x218   : > { %693 = shalt.err (!%p690_p0)
}
 0x219   : > { %s732_s30 = smov 256   ;;  %s733_s10 = smov 16  }
 0x21a   : > { %598 = dma.vmem_to_hbm [thread:$0]  (%p815_p5), %s943_s9, 1024, %s941_s15, %s949_s6, %s732_s30, %s732_s30, %s733_s10  }
 0x21b PF: > { %p604_p1 = scmp.ge.s32.totalorder %s728_s29, 2  ;;  %s531_s14 = sand.u32 1, %s716_s26  }
 0x21c   : > { %s532_s16 = scalar_lea.sflag [#allocation4], %s531_s14 }
 0x21d   : > { %p601_p2 = pnand %p604_p1, %p819_p6 }
 0x21f   : > { %711 = dma.done.wait (!%p601_p2), %s532_s16, 1024  }
 0x220   : > { %713 = vsyncadd (!%p601_p2), %s532_s16, 4294966272  ;;  %p19_p3 = scmp.ge.s32.totalorder %s802_s8, 4   ;;  %s1000_s26 = smov %s720_s27 }
 0x221   : > { %s1001_s27 = smov %s724_s28  ;;  %s1002_s28 = smov %s813_s11 }
 0x222   : > { %s1003_s29 = smov %s802_s8  ;;  %21 = sbr.rel (!%p19_p3) target bundleno = 6 (0x6), region = 83 }
 0x229   :  { %537 = vsyncpa [#allocation4], 1 }
 0x22a   :  { %539 = vsyncpa [#allocation4 + $0x1], 1 }

</bundles_post_ra>
